<compile_context>
chip_gen: v5e
topology: v5e:2x2
jax: 0.10.0
libtpu: 0.0.40
codegen_flags: <defaults>
</compile_context>

<pallas_src>
import functools
import math

import jax
import jax.numpy as jnp
from jax.experimental import pallas as pl
from jax.experimental.pallas import tpu as pltpu


# ----------------------------------------------------------------------------
# Small helpers
# ----------------------------------------------------------------------------
def _round_up(x, m):
    return (x + m - 1) // m * m


def _vmem_limit_bytes():
    """~3/4 of physical VMEM (96 MiB on v5e/v6e, 48 MiB on v7x)."""
    cap = 64 * 1024 * 1024
    try:
        info = pltpu.get_tpu_info()
        cap = int(getattr(info, "vmem_capacity_bytes", cap))
    except Exception:
        pass
    return max(32 * 1024 * 1024, min((cap * 3) // 4, 96 * 1024 * 1024))


_VMEM_LIMIT = _vmem_limit_bytes()


def _spec(block_shape, index_map, buffers=None):
    """BlockSpec with optional deeper multi-buffering (graceful fallback)."""
    if buffers is not None:
        try:
            return pl.BlockSpec(block_shape, index_map,
                                pipeline_mode=pl.Buffered(buffers))
        except Exception:
            pass
    return pl.BlockSpec(block_shape, index_map)


def _choose_tile(dim, align, candidates=(512, 256, 128)):
    """(tile, padded_dim): layout-legal tile (multiple of `align`), capped size,
    never a giant full-dim block for large non-divisible dims."""
    if dim <= 512:
        t = _round_up(dim, align)
        return t, t
    best_c, best_p = None, None
    for c in candidates:
        p = _round_up(dim, c)
        if best_p is None or p < best_p or (p == best_p and c > best_c):
            best_c, best_p = c, p
    return best_c, best_p


def _seq_tile(L, max_tile):
    """(tile, padded_L) along a sequence axis; tile is a multiple of 8."""
    if L <= max_tile:
        t = _round_up(L, 8)
        return t, t
    best_c, best_p = None, None
    for c in (512, 256, 128):
        if c > max_tile:
            continue
        p = _round_up(L, c)
        if best_p is None or p < best_p or (p == best_p and c > best_c):
            best_c, best_p = c, p
    return best_c, best_p


# ----------------------------------------------------------------------------
# Kernel 1: tiled dense projection  y = x @ wt   (wt = W.T, PyTorch Linear)
# ----------------------------------------------------------------------------
def _matmul_kernel(x_ref, wt_ref, o_ref, acc_ref):
    @pl.when(pl.program_id(2) == 0)
    def _init():
        acc_ref[...] = jnp.zeros_like(acc_ref)

    acc_ref[...] += jnp.dot(
        x_ref[...], wt_ref[...], preferred_element_type=jnp.float32
    )

    @pl.when(pl.program_id(2) == pl.num_programs(2) - 1)
    def _finalize():
        o_ref[...] = acc_ref[...].astype(o_ref.dtype)


def linear_pallas(x, wt, out_dtype=None):
    """x: (M, K), wt: (K, N) -> (M, N) = x @ wt, f32 MXU accumulation."""
    if out_dtype is None:
        out_dtype = x.dtype
    if wt.dtype != x.dtype:
        wt = wt.astype(x.dtype)
    M, K = x.shape
    N = wt.shape[1]

    tm, Mp = _choose_tile(M, 8)
    tn, Np = _choose_tile(N, 128)
    if K <= 2048:
        tk, Kp = K, K                       # full-K block is always layout-legal
    else:
        tk, Kp = _choose_tile(K, 128, candidates=(1024, 512, 256))

    if (Mp, Kp) != (M, K):
        x = jnp.pad(x, ((0, Mp - M), (0, Kp - K)))
    if (Kp, Np) != (K, N):
        wt = jnp.pad(wt, ((0, Kp - K), (0, Np - N)))

    grid = (Mp // tm, Np // tn, Kp // tk)
    nsteps = grid[0] * grid[1] * grid[2]
    wbuf = 3 if nsteps >= 3 else None       # stream the weight operand deeper
    itemsize = jnp.dtype(x.dtype).itemsize
    cost = pl.CostEstimate(
        flops=2 * Mp * Np * Kp,
        transcendentals=0,
        bytes_accessed=itemsize * (Mp * Kp + Kp * Np)
        + jnp.dtype(out_dtype).itemsize * Mp * Np,
    )
    out = pl.pallas_call(
        _matmul_kernel,
        out_shape=jax.ShapeDtypeStruct((Mp, Np), out_dtype),
        grid_spec=pltpu.PrefetchScalarGridSpec(
            num_scalar_prefetch=0,
            grid=grid,
            in_specs=[
                _spec((tm, tk), lambda i, j, k: (i, k)),
                _spec((tk, tn), lambda i, j, k: (k, j), buffers=wbuf),
            ],
            out_specs=pl.BlockSpec((tm, tn), lambda i, j, k: (i, j)),
            scratch_shapes=[pltpu.VMEM((tm, tn), jnp.float32)],
        ),
        compiler_params=pltpu.CompilerParams(
            dimension_semantics=("parallel", "parallel", "arbitrary"),
            vmem_limit_bytes=_VMEM_LIMIT,
        ),
        cost_estimate=cost,
    )(x, wt)
    if (Mp, Np) != (M, N):
        out = out[:M, :N]
    return out


# ----------------------------------------------------------------------------
# Kernel 2: flash-style masked multi-head attention.
# grid = (B, Lq/tq, Lk/tk), KV axis last ("arbitrary").  All heads of one
# (batch, q-tile) are handled per step with static lane slices; per-head running
# max / denominator and a (tq, hidden) f32 accumulator live in VMEM scratch.
# Q/K/V blocks are read straight out of the (possibly fused (B, L, 3*hidden))
# projected activations via column-block offsets in the index maps.
# ----------------------------------------------------------------------------
def _attn_kernel(valid_ref, q_ref, k_ref, v_ref, o_ref, m_sc, l_sc, acc_sc,
                 *, num_heads, use_mask):
    kv = pl.program_id(2)
    last_kv = pl.num_programs(2) - 1

    @pl.when(kv == 0)
    def _init():
        m_sc[...] = jnp.full(m_sc.shape, -jnp.inf, m_sc.dtype)
        l_sc[...] = jnp.zeros_like(l_sc)
        acc_sc[...] = jnp.zeros_like(acc_sc)

    _, tq, hidden = q_ref.shape
    tk = k_ref.shape[1]
    d = hidden // num_heads

    # Fold 1/sqrt(d) into Q once (instead of scaling each (tq, tk) score tile).
    q = q_ref[0] * (1.0 / math.sqrt(d))      # stays in the stored (MXU) dtype
    k = k_ref[0]
    v = v_ref[0]

    if use_mask:
        b = pl.program_id(0)
        col = kv * tk + jax.lax.broadcasted_iota(jnp.int32, (tq, tk), 1)

    # TODO(synk): for d < 128, pack several heads into one QK^T matmul with a
    # block-diagonal score mask to fill the MXU contraction dimension.
    for h in range(num_heads):               # static unroll over heads
        lo = h * d
        s = jax.lax.dot_general(
            q[:, lo:lo + d], k[:, lo:lo + d], (((1,), (1,)), ((), ())),
            preferred_element_type=jnp.float32)
        if use_mask:
            # Faithful to the module: np.tile(valid_length, H) indexed at b*H + h.
            vl = valid_ref[b * num_heads + h]
            s = jnp.where(col < vl, s, jnp.float32(-1e6))
        m_prev = m_sc[h]                                       # (tq, 1)
        m_new = jnp.maximum(m_prev, jnp.max(s, axis=-1, keepdims=True))
        alpha = jnp.exp(m_prev - m_new)                        # (tq, 1)
        p = jnp.exp(s - m_new)                                 # (tq, tk) f32
        l_sc[h] = alpha * l_sc[h] + jnp.sum(p, axis=-1, keepdims=True)
        m_sc[h] = m_new
        pv = jnp.dot(p.astype(v.dtype), v[:, lo:lo + d],
                     preferred_element_type=jnp.float32)       # (tq, d)
        acc_sc[:, lo:lo + d] = alpha * acc_sc[:, lo:lo + d] + pv

    @pl.when(kv == last_kv)
    def _finalize():
        for h in range(num_heads):
            lo = h * d
            inv_l = pl.reciprocal(l_sc[h], approx=True)        # EUP, (tq, 1)
            acc_sc[:, lo:lo + d] = acc_sc[:, lo:lo + d] * inv_l
        o_ref[0] = acc_sc[...].astype(o_ref.dtype)             # one lane-dense store


def attention_pallas(q_arr, k_arr, v_arr, valid_bh, num_heads, hidden,
                     col_offsets, Lq, Lk, use_mask):
    B = q_arr.shape[0]
    comp = q_arr.dtype
    tq, Lq_p = _seq_tile(Lq, 256)
    tk, Lk_p = _seq_tile(Lk, 512)

    fused = q_arr is k_arr
    if fused:                               # self-attention, shared storage
        L_p = max(Lq_p, Lk_p)
        if L_p != q_arr.shape[1]:
            q_arr = jnp.pad(q_arr, ((0, 0), (0, L_p - q_arr.shape[1]), (0, 0)))
        k_arr = v_arr = q_arr
    else:
        if Lq_p != Lq:
            q_arr = jnp.pad(q_arr, ((0, 0), (0, Lq_p - Lq), (0, 0)))
        if Lk_p != Lk:
            k_arr = jnp.pad(k_arr, ((0, 0), (0, Lk_p - Lk), (0, 0)))
            v_arr = jnp.pad(v_arr, ((0, 0), (0, Lk_p - Lk), (0, 0)))
    if Lk_p != Lk and not use_mask:
        # Padded KV columns must not receive attention weight.
        use_mask = True
        valid_bh = jnp.full((B * num_heads,), Lk, dtype=jnp.int32)

    q_off, k_off, v_off = col_offsets
    grid = (B, Lq_p // tq, Lk_p // tk)
    nsteps = grid[0] * grid[1] * grid[2]
    kvbuf = 3 if nsteps >= 3 else None
    itemsize = jnp.dtype(comp).itemsize
    cost = pl.CostEstimate(
        flops=4 * B * Lq_p * Lk_p * hidden,
        transcendentals=B * num_heads * Lq_p * Lk_p,
        bytes_accessed=itemsize * (2 * B * Lq_p * hidden
                                   + 2 * B * (Lq_p // tq) * Lk_p * hidden),
    )
    grid_spec = pltpu.PrefetchScalarGridSpec(
        num_scalar_prefetch=1,
        grid=grid,
        in_specs=[
            _spec((1, tq, hidden), lambda b, qi, ki, vr: (b, qi, q_off)),
            _spec((1, tk, hidden), lambda b, qi, ki, vr: (b, ki, k_off), buffers=kvbuf),
            _spec((1, tk, hidden), lambda b, qi, ki, vr: (b, ki, v_off), buffers=kvbuf),
        ],
        out_specs=pl.BlockSpec((1, tq, hidden), lambda b, qi, ki, vr: (b, qi, 0)),
        scratch_shapes=[
            pltpu.VMEM((num_heads, tq, 1), jnp.float32),   # running max / head
            pltpu.VMEM((num_heads, tq, 1), jnp.float32),   # running denom / head
            pltpu.VMEM((tq, hidden), jnp.float32),         # output accumulator
        ],
    )
    out = pl.pallas_call(
        functools.partial(_attn_kernel, num_heads=num_heads, use_mask=use_mask),
        out_shape=jax.ShapeDtypeStruct((B, Lq_p, hidden), comp),
        grid_spec=grid_spec,
        compiler_params=pltpu.CompilerParams(
            dimension_semantics=("parallel", "parallel", "arbitrary"),
            vmem_limit_bytes=_VMEM_LIMIT,
        ),
        cost_estimate=cost,
    )(valid_bh, q_arr, k_arr, v_arr)
    if Lq_p != Lq:
        out = out[:, :Lq, :]
    return out


# ----------------------------------------------------------------------------
# MultiHeadAttention forward.  make_mha() prepares (transposed / fused) weights
# ONCE and returns a callable: forward(query, key, value, valid_length).
# ----------------------------------------------------------------------------
def make_mha(params, num_heads, mxu_dtype=jnp.bfloat16):
    """mxu_dtype=None keeps the input dtype end-to-end (exact f32 path);
    mxu_dtype=jnp.bfloat16 feeds the MXU natively with f32 accumulation."""
    Wq, Wk, Wv, Wo = params
    hidden, in_sz = Wq.shape
    assert hidden % num_heads == 0
    cdt = mxu_dtype

    def prep(w):
        wt = jnp.asarray(w).T
        return wt.astype(cdt) if cdt is not None else wt

    wq_t, wk_t, wv_t, wo_t = prep(Wq), prep(Wk), prep(Wv), prep(Wo)
    fuse_ok = hidden % 128 == 0
    wqkv_t = jnp.concatenate([wq_t, wk_t, wv_t], axis=1) if fuse_ok else None

    def forward(query, key, value, valid_length):
        B, Lq, _ = query.shape
        Lk = key.shape[1]
        in_dt = query.dtype
        comp = cdt if cdt is not None else in_dt

        self_attn = (query is key) and (key is value) and fuse_ok
        if self_attn:
            # Fused QKV projection: one matmul against (in, 3*hidden); the
            # attention kernel indexes Q/K/V as column blocks of the result.
            xq = query.reshape(B * Lq, in_sz).astype(comp)
            qkv = linear_pallas(xq, wqkv_t, out_dtype=comp).reshape(B, Lq, 3 * hidden)
            q_arr = k_arr = v_arr = qkv
            col_off = (0, 1, 2)
        else:
            xq = query.reshape(B * Lq, in_sz).astype(comp)
            xk = key.reshape(B * Lk, in_sz).astype(comp)
            xv = value.reshape(B * Lk, in_sz).astype(comp)
            q_arr = linear_pallas(xq, wq_t, out_dtype=comp).reshape(B, Lq, hidden)
            k_arr = linear_pallas(xk, wk_t, out_dtype=comp).reshape(B, Lk, hidden)
            v_arr = linear_pallas(xv, wv_t, out_dtype=comp).reshape(B, Lk, hidden)
            col_off = (0, 0, 0)

        use_mask = valid_length is not None
        if use_mask:
            # Faithful to the module: np.tile(valid_length, H) indexed at b*H + h.
            valid_bh = jnp.tile(valid_length.astype(jnp.int32), num_heads)
        else:
            valid_bh = jnp.zeros((1,), jnp.int32)   # dummy, never read
        # TODO(synk): 2-D (per-query) valid_length branch not implemented.

        ctx = attention_pallas(q_arr, k_arr, v_arr, valid_bh, num_heads, hidden,
                               col_off, Lq, Lk, use_mask)       # (B, Lq, hidden)
        out = linear_pallas(ctx.reshape(B * Lq, hidden), wo_t, out_dtype=in_dt)
        return out.reshape(B, Lq, hidden)

    return forward


# ----------------------------------------------------------------------------
# Pure-JAX reference (mirrors the PyTorch module exactly, incl. np.tile quirk)
# ----------------------------------------------------------------------------
def _transpose_qkv_ref(X, num_heads):
    B, L, H = X.shape
    X = X.reshape(B, L, num_heads, H // num_heads).transpose(0, 2, 1, 3)
    return X.reshape(B * num_heads, L, H // num_heads)


def _transpose_output_ref(X, num_heads):
    BH, L, d = X.shape
    B = BH // num_heads
    X = X.reshape(B, num_heads, L, d).transpose(0, 2, 1, 3)
    return X.reshape(B, L, num_heads * d)


def reference_mha(query, key, value, valid_length, params, num_heads):
    Wq, Wk, Wv, Wo = params
    Q = _transpose_qkv_ref(query @ Wq.T, num_heads)
    K = _transpose_qkv_ref(key @ Wk.T, num_heads)
    V = _transpose_qkv_ref(value @ Wv.T, num_heads)
    d = Q.shape[-1]
    scores = jnp.einsum("bqd,bkd->bqk", Q, K) / math.sqrt(d)
    if valid_length is None:
        attn = jax.nn.softmax(scores, axis=-1)
    else:
        vt = jnp.tile(valid_length, num_heads)
        col = jnp.arange(scores.shape[-1])
        mask = col[None, None, :] < vt[:, None, None]
        attn = jax.nn.softmax(jnp.where(mask, scores, -1e6), axis=-1)
    out = jnp.einsum("bqk,bkd->bqd", attn, V)
    return _transpose_output_ref(out, num_heads) @ Wo.T


if __name__ == "__main__":
    # Small shapes consistent with the module: batch=2, seq_q=8, seq_kv=16,
    # input_size=64, hidden_size=128, num_heads=4 (head_dim=32).
    B, Lq, Lk = 2, 8, 16
    input_size, hidden_size, num_heads = 64, 128, 4

    key0 = jax.random.PRNGKey(0)
    kwq, kwk, kwv, kwo, kq, kk, kv = jax.random.split(key0, 7)
    ws_in = 1.0 / math.sqrt(input_size)
    ws_hd = 1.0 / math.sqrt(hidden_size)
    Wq = jax.random.normal(kwq, (hidden_size, input_size), jnp.float32) * ws_in
    Wk = jax.random.normal(kwk, (hidden_size, input_size), jnp.float32) * ws_in
    Wv = jax.random.normal(kwv, (hidden_size, input_size), jnp.float32) * ws_in
    Wo = jax.random.normal(kwo, (hidden_size, hidden_size), jnp.float32) * ws_hd
    params = (Wq, Wk, Wv, Wo)

    mha_f32 = make_mha(params, num_heads, mxu_dtype=None)           # exact path
    mha_bf16 = make_mha(params, num_heads, mxu_dtype=jnp.bfloat16)  # fast MXU path

    def check(name, fn, q, k, v, vl, atol, rtol):
        out = jax.block_until_ready(fn(q, k, v, vl))
        ref = reference_mha(q, k, v, vl, params, num_heads)
        assert out.shape == ref.shape, f"{name}: shape {out.shape} vs {ref.shape}"
        outf = out.astype(jnp.float32)
        err = float(jnp.max(jnp.abs(outf - ref)))
        assert jnp.allclose(outf, ref, atol=atol, rtol=rtol), f"{name}: max err {err}"

    x = jax.random.normal(kq, (B, Lq, input_size), jnp.float32)
    q_in = jax.random.normal(kq, (B, Lq, input_size), jnp.float32)
    k_in = jax.random.normal(kk, (B, Lk, input_size), jnp.float32)
    v_in = jax.random.normal(kv, (B, Lk, input_size), jnp.float32)
    vl_self = jnp.array([3, 6], dtype=jnp.int32)
    vl_cross = jnp.array([5, 11], dtype=jnp.int32)

    # f32 MXU path: tight tolerance (only the approximate EUP reciprocal differs).
    check("self/f32", mha_f32, x, x, x, vl_self, 5e-3, 5e-3)
    check("cross/f32", mha_f32, q_in, k_in, v_in, vl_cross, 5e-3, 5e-3)
    check("nomask/f32", mha_f32, q_in, k_in, v_in, None, 5e-3, 5e-3)
    # bf16 MXU path (f32 accumulation): bf16 input rounding dominates the error.
    check("self/bf16", mha_bf16, x, x, x, vl_self, 6e-2, 6e-2)
    check("cross/bf16", mha_bf16, q_in, k_in, v_in, vl_cross, 6e-2, 6e-2)

    print("KERNEL_OK")
</pallas_src>

<mosaic_0001>
module attributes {stable_mosaic.version = 11 : i64} {
  func.func @_matmul_kernel(%arg0: i32, %arg1: i32, %arg2: i32, %arg3: memref<16x64xf32, #tpu.memory_space<vmem>>, %arg4: memref<64x384xf32, #tpu.memory_space<vmem>>, %arg5: memref<16x384xf32, #tpu.memory_space<vmem>>, %arg6: memref<16x384xf32, #tpu.memory_space<vmem>>) attributes {dimension_semantics = [#tpu.dimension_semantics<parallel>, #tpu.dimension_semantics<parallel>, #tpu.dimension_semantics<arbitrary>], iteration_bounds = array<i64: 1, 1, 1>, scalar_prefetch = 0 : i64, scratch_operands = 1 : i64, tpu.core_type = #tpu.core_type<tc>, window_params = [{transform_indices = @transform_0, window_bounds = array<i64: 16, 64>}, {transform_indices = @transform_1, window_bounds = array<i64: 64, 384>}, {transform_indices = @transform_2, window_bounds = array<i64: 16, 384>}]} {
    %c0_i32 = arith.constant 0 : i32
    %0 = arith.cmpi eq, %arg2, %c0_i32 : i32
    %1 = arith.extui %0 : i1 to i32
    %c0_i32_0 = arith.constant 0 : i32
    %2 = arith.cmpi ne, %1, %c0_i32_0 : i32
    scf.if %2 {
      %cst_10 = arith.constant 0.000000e+00 : f32
      %12 = vector.broadcast %cst_10 : f32 to vector<16x384xf32>
      %c0_11 = arith.constant 0 : index
      %c0_12 = arith.constant 0 : index
      %13 = vector.load %arg6[%c0_11, %c0_12] : memref<16x384xf32, #tpu.memory_space<vmem>>, vector<16x384xf32>
      tpu.vector_store %arg6[%c0_11, %c0_12], %12 {strides = array<i32>} : memref<16x384xf32, #tpu.memory_space<vmem>>, vector<16x384xf32>,
    } else {
    }
    %c0 = arith.constant 0 : index
    %c0_1 = arith.constant 0 : index
    %3 = vector.load %arg6[%c0, %c0_1] : memref<16x384xf32, #tpu.memory_space<vmem>>, vector<16x384xf32>
    %c0_2 = arith.constant 0 : index
    %c0_3 = arith.constant 0 : index
    %4 = vector.load %arg3[%c0_2, %c0_3] : memref<16x64xf32, #tpu.memory_space<vmem>>, vector<16x64xf32>
    %c0_4 = arith.constant 0 : index
    %c0_5 = arith.constant 0 : index
    %5 = vector.load %arg4[%c0_4, %c0_5] : memref<64x384xf32, #tpu.memory_space<vmem>>, vector<64x384xf32>
    %cst = arith.constant dense<0.000000e+00> : vector<16x384xf32>
    %6 = tpu.matmul %4, %5, %cst {dimension_numbers = #tpu.dot_dimension_numbers<[1], [0], [0], [1], [0, 0, 1, 1], [], []>} : vector<16x64xf32>, vector<64x384xf32>, vector<16x384xf32> -> vector<16x384xf32>
    %7 = arith.addf %3, %6 : vector<16x384xf32>
    %c0_6 = arith.constant 0 : index
    %c0_7 = arith.constant 0 : index
    %8 = vector.load %arg6[%c0_6, %c0_7] : memref<16x384xf32, #tpu.memory_space<vmem>>, vector<16x384xf32>
    tpu.vector_store %arg6[%c0_6, %c0_7], %7 {strides = array<i32>} : memref<16x384xf32, #tpu.memory_space<vmem>>, vector<16x384xf32>,
    %c0_i32_8 = arith.constant 0 : i32
    %9 = arith.cmpi eq, %arg2, %c0_i32_8 : i32
    %10 = arith.extui %9 : i1 to i32
    %c0_i32_9 = arith.constant 0 : i32
    %11 = arith.cmpi ne, %10, %c0_i32_9 : i32
    scf.if %11 {
      %c0_10 = arith.constant 0 : index
      %c0_11 = arith.constant 0 : index
      %12 = vector.load %arg6[%c0_10, %c0_11] : memref<16x384xf32, #tpu.memory_space<vmem>>, vector<16x384xf32>
      %c0_12 = arith.constant 0 : index
      %c0_13 = arith.constant 0 : index
      %13 = vector.load %arg5[%c0_12, %c0_13] : memref<16x384xf32, #tpu.memory_space<vmem>>, vector<16x384xf32>
      tpu.vector_store %arg5[%c0_12, %c0_13], %12 {strides = array<i32>} : memref<16x384xf32, #tpu.memory_space<vmem>>, vector<16x384xf32>,
    } else {
    }
    return
  }
  func.func @transform_0(%arg0: i32, %arg1: i32, %arg2: i32) -> (i32, i32) {
    %c0_i32 = arith.constant 0 : i32
    return %arg0, %arg2 : i32, i32
  }
  func.func @transform_1(%arg0: i32, %arg1: i32, %arg2: i32) -> (i32, i32) {
    %c0_i32 = arith.constant 0 : i32
    return %arg2, %arg1 : i32, i32
  }
  func.func @transform_2(%arg0: i32, %arg1: i32, %arg2: i32) -> (i32, i32) {
    %c0_i32 = arith.constant 0 : i32
    return %arg0, %arg1 : i32, i32
  }
}

</mosaic_0001>

<bundles_post_ra>
// kernel: tpu_custom_call.1
= control target key start
LH: loop header
LB: loop body
LE: loop exit
PB: predicated region body
PF: predicated region fallthrough
CT: control target
= control target key end

     0   :  { %7 = vsyncpa [#allocation4], 0  ;;  %s351_s0 = inlined_call_operand.hbm [shape: f32[16,64], index: 0, kind: input, shape index: {}]   ;;  %s352_s1 = inlined_call_operand.hbm [shape: f32[64,384], index: 1, kind: input, shape index: {}]   ;;  %s353_s2 = inlined_call_operand.hbm [shape: f32[16,384], index: 2, kind: output, shape index: {}]  }
   0x1   :  { %8 = vsyncpa [#allocation7], 0 }
   0x2   :  { %9 = vsyncpa [#allocation5], 0  ;;  %s14_s11 = sshll.u32 %s351_s0, 4  ;;  %s308_s12 = smov [#allocation3]   ;;  %s15_s11 = int_to_ptr.hbm [resolvable:$true] %s14_s11 }
   0x3   :  { %s16_s13 = sshll.u32 %s308_s12, 4  ;;  %s27_s16 = sshll.u32 %s352_s1, 4  ;;  %s17_s13 = int_to_ptr.vmem [resolvable:$true] %s16_s13  ;;  %s28_s16 = int_to_ptr.hbm [resolvable:$true] %s27_s16 }
   0x4   :  { %s309_s17 = smov 128   ;;  %s310_s18 = smov 8  }
   0x5   :  { %22 = dma.hbm_to_vmem [thread:$0]  %s15_s11, 256, %s17_s13, [#allocation4], %s309_s17, %s309_s17, %s310_s18  }
   0x6   :  { %s311_s19 = smov [#allocation6]   ;;  %s312_s21 = smov 384  }
   0x7   :  { %s29_s20 = sshll.u32 %s311_s19, 4  ;;  %s313_s22 = smov 24   ;;  %s30_s20 = int_to_ptr.vmem [resolvable:$true] %s29_s20 }
   0x8   :  { %35 = dma.hbm_to_vmem [thread:$0]  %s28_s16, 3072, %s30_s20, [#allocation7], %s312_s21, %s312_s21, %s313_s22  }
   0x9   :  { %302 = dma.done.wait [#allocation4], 256  }
   0xa   :  { %303 = vsyncadd [#allocation4], 4294967040 }
   0xb   :  { %304 = dma.done.wait [#allocation7], 3072  }
   0xc   :  { %305 = vsyncadd [#allocation7], 4294964224  ;;  %v85_v0 = vld [vmem:[#allocation6 + $0xb8] sm:$0xff]  ;;  %v82_v1 = vld [vmem:[#allocation6 + $0xa0] sm:$0xff]  ;;  %vm86_vm0 = vcmask 523264   ;;  %s314_s0 = smov [#allocation8]  }
   0xd   :  { %147 = vmatpush.msra.mxu2 %v85_v0  ;;  %v84_v2 = vld [vmem:[#allocation6 + $0xb0] sm:$0xff]  ;;  %v83_v3 = vld [vmem:[#allocation6 + $0xa8] sm:$0xff]  ;;  %v81_v5 = vld [vmem:[#allocation6 + $0x98] sm:$0xff]  ;;  %s193_s1 = sshll.u32 %s314_s0, 4  ;;  %s195_s25 = sshll.u32 %s353_s2, 4  ;;  %s194_s1 = int_to_ptr.vmem [resolvable:$true] %s193_s1  ;;  %s196_s25 = int_to_ptr.hbm [resolvable:$true] %s195_s25 }
   0xe   :  { %v79_v4 = vld [vmem:[#allocation6 + $0x88] sm:$0xff]  ;;  %124 = vmatpush.msra.mxu1 %v84_v2  ;;  %215 = vmatpush.msra.mxu3 %v83_v3  ;;  %v80_v6 = vld [vmem:[#allocation6 + $0x90] sm:$0xff]  ;;  %v78_v7 = vld [vmem:[#allocation6 + $0x80] sm:$0xff] }
   0xf   :  { %148 = vmatpush.msra.mxu2 %v82_v1  ;;  %v77_v8 = vld [vmem:[#allocation6 + $0x78] sm:$0xff]  ;;  %101 = vmatpush.msra.mxu0 %v83_v3  ;;  %v76_v9 = vld [vmem:[#allocation6 + $0x70] sm:$0xff]  ;;  %v75_v10 = vld [vmem:[#allocation6 + $0x68] sm:$0xff] }
  0x10   :  { %125 = vmatpush.msra.mxu1 %v81_v5  ;;  %216 = vmatpush.msra.mxu3 %v80_v6  ;;  %v74_v11 = vld [vmem:[#allocation6 + $0x60] sm:$0xff]  ;;  %v73_v12 = vld [vmem:[#allocation6 + $0x58] sm:$0xff]  ;;  %v72_v13 = vld [vmem:[#allocation6 + $0x50] sm:$0xff] }
  0x11   :  { %149 = vmatpush.msra.mxu2 %v79_v4  ;;  %102 = vmatpush.msra.mxu0 %v80_v6  ;;  %v71_v14 = vld [vmem:[#allocation6 + $0x48] sm:$0xff]  ;;  %v70_v15 = vld [vmem:[#allocation6 + $0x40] sm:$0xff]  ;;  %v69_v16 = vld [vmem:[#allocation6 + $0x38] sm:$0xff] }
  0x12   :  { %126 = vmatpush.msra.mxu1 %v78_v7  ;;  %217 = vmatpush.msra.mxu3 %v77_v8  ;;  %v68_v17 = vld [vmem:[#allocation6 + $0x30] sm:$0xff]  ;;  %v67_v18 = vld [vmem:[#allocation6 + $0x28] sm:$0xff]  ;;  %v66_v19 = vld [vmem:[#allocation6 + $0x20] sm:$0xff] }
  0x13   :  { %150 = vmatpush.msra.mxu2 %v76_v9  ;;  %103 = vmatpush.msra.mxu0 %v77_v8  ;;  %v65_v20 = vld [vmem:[#allocation6 + $0x18] sm:$0xff]  ;;  %v64_v21 = vld [vmem:[#allocation6 + $0x10] sm:$0xff]  ;;  %v63_v23 = vld [vmem:[#allocation6 + $0x8] sm:$0xff] }
  0x14   :  { %127 = vmatpush.msra.mxu1 %v75_v10  ;;  %218 = vmatpush.msra.mxu3 %v74_v11  ;;  %v60_v22 = vld [vmem:[#allocation3] sm:$0xff]  ;;  %v62_v24 = vld [vmem:[#allocation6] sm:$0xff]  ;;  %v61_v25 = vld [vmem:[#allocation3 + $0x8] sm:$0xff] }
  0x15   :  { %151 = vmatpush.msra.mxu2 %v73_v12  ;;  %104 = vmatpush.msra.mxu0 %v74_v11 }
  0x16   :  { %128 = vmatpush.msra.mxu1 %v72_v13  ;;  %219 = vmatpush.msra.mxu3 %v71_v14 }
  0x17   :  { %152 = vmatpush.msra.mxu2 %v70_v15  ;;  %105 = vmatpush.msra.mxu0 %v71_v14 }
  0x18   :  { %129 = vmatpush.msra.mxu1 %v69_v16  ;;  %220 = vmatpush.msra.mxu3 %v68_v17 }
  0x19   :  { %153 = vmatpush.msra.mxu2 %v67_v18  ;;  %106 = vmatpush.msra.mxu0 %v68_v17 }
  0x1a   :  { %130 = vmatpush.msra.mxu1 %v66_v19  ;;  %221 = vmatpush.msra.mxu3 %v65_v20 }
  0x1b   :  { %154 = vmatpush.msra.mxu2 %v64_v21  ;;  %107 = vmatpush.msra.mxu0 %v65_v20 }
  0x1c   :  { %213 = vmatmul.msk.f32.vlgmr.msra.gmra.mxu2 %vm86_vm0, %v60_v22  ;;  %131 = vmatpush.msra.mxu1 %v63_v23 }
  0x1d   :  { %211 = vmatmul.msk.f32.vlgmr.msra.gmra.mxu1 %vm86_vm0, %v60_v22  ;;  %222 = vmatpush.msra.mxu3 %v62_v24 }
  0x1e   :  { %210 = vmatmul.msk.f32.vlgmr.msra.gmra.mxu3 %vm86_vm0, %v61_v25  ;;  %108 = vmatpush.msra.mxu0 %v62_v24 }
  0x1f   :  { %209 = vmatmul.msk.f32.vlgmr.msra.gmra.mxu0 %vm86_vm0, %v60_v22 }
  0x24   :  { %214 = vmatmul.msk.f32.gmra.mxu2 %vm86_vm0, %v61_v25 }
  0x25   :  { %212 = vmatmul.msk.f32.gmra.mxu1 %vm86_vm0, %v61_v25 }
  0x9a   :  { %v133_v26 = vpop.f32.mrf.mxu1 }
  0x9b   :  { %184 = vst [vmem:[#allocation8 + $0x8] sm:$0xff] %v133_v26 }
  0x9c   :  { %v110_v27 = vpop.f32.mrf.mxu0 }
  0x9d   :  { %183 = vst [vmem:[#allocation8] sm:$0xff] %v110_v27 }
  0x9f   :  { %v156_v28 = vpop.f32.mrf.mxu2 }
  0xa0   :  { %185 = vst [vmem:[#allocation8 + $0x10] sm:$0xff] %v156_v28 }
  0xa1   :  { %v113_v29 = vpop.f32.mrf.mxu3 }
  0xa2   :  { %186 = vst [vmem:[#allocation8 + $0x18] sm:$0xff] %v113_v29  ;;  %v136_v30 = vpop.f32.mrf.mxu1 }
  0xa3   :  { %187 = vst [vmem:[#allocation8 + $0x20] sm:$0xff] %v136_v30 }
  0xa7   :  { %v159_v31 = vpop.f32.mrf.mxu2 }
  0xa8   :  { %188 = vst [vmem:[#allocation8 + $0x28] sm:$0xff] %v159_v31 }
  0xa9   :  { %201 = dma.vmem_to_hbm [thread:$0]  %s194_s1, 768, %s196_s25, [#allocation5], %s312_s21, %s312_s21, %s313_s22  }
  0xaa   :  { %306 = dma.done.wait [#allocation5], 768  }
  0xab   :  { %307 = vsyncadd [#allocation5], 4294966528 }
  0xac   :  { %206 = vsyncpa [#allocation4], 1 }
  0xad   :  { %207 = vsyncpa [#allocation7], 1 }
  0xae   :  { %208 = vsyncpa [#allocation5], 1 }

</bundles_post_ra>
